<compile_context>
chip_gen: v7x
topology: tpu7x:2x2x1
jax: 0.10.0
libtpu: 0.0.40
codegen_flags: <defaults>
</compile_context>

<pallas_src>
import functools

import jax
import jax.numpy as jnp
from jax import lax
from jax.experimental import pallas as pl
from jax.experimental.pallas import tpu as pltpu

EPS = 1e-6
LEAKY_SLOPE = 0.01          # F.leaky_relu default negative_slope
_F32 = jnp.float32
_HIGHEST = lax.Precision.HIGHEST


# ---------------------------------------------------------------------------
# Pallas kernel: fused ConvNeXt pointwise tail.
#   Block layout: channels on sublanes, pixels lane-dense.
#   x4   : (4C, T)  output of the depthwise 7x7 conv
#   skip : (C,  T)  residual input of the ConvNeXt block
#   out  : (C,  T)  LN(x4) -> conv2(1x1) -> leaky_relu -> conv3(1x1) -> +skip
# ---------------------------------------------------------------------------
def _convnext_tail_kernel(x_ref, skip_ref, lnp_ref, w2_ref, w3_ref, b_ref,
                          o_ref):
    x = x_ref[...].astype(_F32)                         # (4C, T)
    gamma = lnp_ref[:, 0:1]                             # (4C, 1)
    beta = lnp_ref[:, 1:2]                              # (4C, 1)

    # Channel-only LayerNorm: reduce over the (small) sublane axis.
    # Two-pass moments kept on purpose: the kernel is HBM-bound so the extra
    # VPU pass is free filler, and two-pass is numerically safer than
    # E[x^2] - mean^2 (single-pass only if a bundle dump shows VALU binding).
    mean = jnp.mean(x, axis=0, keepdims=True)            # (1, T)
    centered = x - mean
    var = jnp.mean(centered * centered, axis=0, keepdims=True)
    xn = centered * lax.rsqrt(var + EPS) * gamma + beta  # (4C, T)

    # conv2: 1x1, 4C -> C, as an MXU matmul on the lane-dense tile.
    h = jnp.dot(w2_ref[...], xn, precision=_HIGHEST,
                preferred_element_type=_F32) + b_ref[:, 0:1]    # (C, T)
    h = jnp.where(h >= 0, h, LEAKY_SLOPE * h)                    # leaky_relu
    # conv3: 1x1, C -> C.
    y = jnp.dot(w3_ref[...], h, precision=_HIGHEST,
                preferred_element_type=_F32) + b_ref[:, 1:2]     # (C, T)
    # Residual add and store (garbage in cdiv tail-padding lanes never crosses
    # lanes: both matmuls contract over the channel/sublane axis only).
    o_ref[...] = (y + skip_ref[...].astype(_F32)).astype(o_ref.dtype)


# ---------------------------------------------------------------------------
# Tiling heuristics (generation-aware).
# ---------------------------------------------------------------------------
def _round_up(v: int, m: int) -> int:
    return -(-v // m) * m


def _chip_budgets():
    """Generation-aware block / VMEM budgets."""
    try:
        kind = jax.devices()[0].device_kind.lower()
    except Exception:
        kind = ""
    big_vmem = any(t in kind for t in ("v4", "v5", "v6"))
    if big_vmem:
        # 128 MiB VMEM, single TensorCore: bigger lane-dense blocks amortize
        # the ~0.35 us/step pipeline overhead.
        return dict(block_bytes=6 << 20, vmem_limit=64 << 20, split_even=False)
    # v7x (64 MiB VMEM, 2 TensorCores) or unknown chip: conservative blocks,
    # and prefer an even program count so both TCs get equal work.
    return dict(block_bytes=2 << 20, vmem_limit=32 << 20, split_even=True)


def _choose_tile_n(n_cols: int, bytes_per_lane: int, n_batch: int,
                   block_bytes: int, split_even: bool) -> int:
    """Lane-dense tile width: largest multiple of 128 inside the per-block
    budget, clamped explicitly (no silent over-budget), always >= 128."""
    n_pad = _round_up(n_cols, 128)
    budget = max(128, (block_bytes // max(bytes_per_lane, 1)) // 128 * 128)
    tile = min(budget, n_pad)
    if split_even:
        n_tiles = -(-n_pad // tile)
        if (n_batch * n_tiles) % 2 == 1 and n_pad > 128:
            # Make the per-batch tile count even (v7x 2-TC load balance).
            target = n_tiles + 1 if n_tiles > 1 else 2
            tile = max(128, _round_up(-(-n_pad // target), 128))
    return tile


# ---------------------------------------------------------------------------
# Fused pointwise-tail wrapper.
# ---------------------------------------------------------------------------
@jax.jit
def convnext_pointwise_tail(x4, skip, gamma, beta, w2, b2, w3, b3):
    """Fused LN -> conv2(1x1) -> leaky_relu -> conv3(1x1) -> +skip.

    x4   : (B, 4C, H, W)  depthwise-conv output
    skip : (B,  C, H, W)  residual input of the ConvNeXt block
    returns (B, C, H, W)
    """
    b, c4, h, w = x4.shape
    c = skip.shape[1]
    n = h * w
    itemsize = jnp.dtype(x4.dtype).itemsize
    budgets = _chip_budgets()

    # Tiny resident parameter blocks (constant index_map -> one small DMA).
    lnp = jnp.stack([gamma, beta], axis=-1).astype(_F32)      # (4C, 2)
    w2f = w2.astype(_F32)                                     # (C, 4C)
    w3f = w3.astype(_F32)                                     # (C, C)
    bias = jnp.stack([b2, b3], axis=-1).astype(_F32)          # (C, 2)
    param_args = (lnp, w2f, w3f, bias)

    def _param_specs(const_map):
        return [pl.BlockSpec((c4, 2), const_map),
                pl.BlockSpec((c, c4), const_map),
                pl.BlockSpec((c, c), const_map),
                pl.BlockSpec((c, 2), const_map)]

    x4_3 = x4.reshape(b, c4, n)          # NCHW -> (B, 4C, N): free reshape
    skip3 = skip.reshape(b, c, n)
    bytes_per_lane = (c4 + 2 * c) * itemsize   # x4 + skip + out per lane col

    if n >= 128:
        tile_n = _choose_tile_n(n, bytes_per_lane, b,
                                budgets["block_bytes"], budgets["split_even"])
        grid = (b, pl.cdiv(n, tile_n))
        out3 = pl.pallas_call(
            _convnext_tail_kernel,
            out_shape=jax.ShapeDtypeStruct((b, c, n), skip.dtype),
            grid=grid,
            in_specs=[
                pl.BlockSpec((None, c4, tile_n), lambda bi, ni: (bi, 0, ni)),
                pl.BlockSpec((None, c, tile_n), lambda bi, ni: (bi, 0, ni)),
                *_param_specs(lambda bi, ni: (0, 0)),
            ],
            out_specs=pl.BlockSpec((None, c, tile_n),
                                   lambda bi, ni: (bi, 0, ni)),
            compiler_params=pltpu.CompilerParams(
                dimension_semantics=("parallel", "parallel"),
                vmem_limit_bytes=budgets["vmem_limit"]),
        )(x4_3, skip3, *param_args)
        return out3.reshape(b, c, h, w)

    # H*W < 128: fold batch into the lane axis (one cheap up-front relayout,
    # amortized over the whole fused chain) so stores stay lane-dense.
    bn = b * n
    x4m = x4_3.transpose(1, 0, 2).reshape(c4, bn)
    skm = skip3.transpose(1, 0, 2).reshape(c, bn)
    tile_n = _choose_tile_n(bn, bytes_per_lane, 1,
                            budgets["block_bytes"], budgets["split_even"])
    grid = (pl.cdiv(bn, tile_n),)
    out2 = pl.pallas_call(
        _convnext_tail_kernel,
        out_shape=jax.ShapeDtypeStruct((c, bn), skip.dtype),
        grid=grid,
        in_specs=[
            pl.BlockSpec((c4, tile_n), lambda ni: (0, ni)),
            pl.BlockSpec((c, tile_n), lambda ni: (0, ni)),
            *_param_specs(lambda ni: (0, 0)),
        ],
        out_specs=pl.BlockSpec((c, tile_n), lambda ni: (0, ni)),
        compiler_params=pltpu.CompilerParams(
            dimension_semantics=("parallel",),
            vmem_limit_bytes=budgets["vmem_limit"]),
    )(x4m, skm, *param_args)
    return out2.reshape(c, b, n).transpose(1, 0, 2).reshape(b, c, h, w)


# ---------------------------------------------------------------------------
# Remaining DecoderModule ops (XLA, not Pallas).
# ---------------------------------------------------------------------------
def _depthwise_conv7(x, w, b, groups):
    """PyTorch Conv2d(c, 4c, kernel_size=7, groups=c, padding='same')."""
    # TODO(synk): the grouped 7x7 depthwise conv stays on the XLA conv path
    # (NCHW).  Fusing it into the Pallas block kernel (49 shifted MACs on the
    # lane-dense (C, H*W) layout) is the remaining HBM-traffic win.
    y = lax.conv_general_dilated(
        x, w, window_strides=(1, 1), padding="SAME",
        dimension_numbers=("NCHW", "OIHW", "NCHW"),
        feature_group_count=groups)
    return y + b[None, :, None, None]


def _conv_transpose_nonoverlap(x, w, b, factor):
    """PyTorch ConvTranspose2d(c_in, c_out, kernel_size=f, stride=f).
    kernel == stride -> per-pixel (Cin -> Cout*f*f) matmul with the pixel axis
    lane-dense, then a depth-to-space reshape (no 6-D einsum intermediate)."""
    bsz, cin, h, wd = x.shape
    cout = w.shape[1]
    wf = w.reshape(cin, cout * factor * factor)
    y = jnp.einsum("ck,bcn->bkn", wf, x.reshape(bsz, cin, h * wd),
                   precision=_HIGHEST, preferred_element_type=_F32)
    y = y.reshape(bsz, cout, factor, factor, h, wd)
    y = y.transpose(0, 1, 4, 2, 5, 3).reshape(bsz, cout, h * factor,
                                              wd * factor)
    return (y + b[None, :, None, None]).astype(x.dtype)


def _convnext_block(x, p):
    c = x.shape[1]
    x4 = _depthwise_conv7(x, p["conv1_w"], p["conv1_b"], groups=c)
    return convnext_pointwise_tail(x4, x, p["ln_gamma"], p["ln_beta"],
                                   p["conv2_w"], p["conv2_b"],
                                   p["conv3_w"], p["conv3_b"])


@functools.partial(jax.jit, static_argnames=("spatial_factor",))
def decoder_module_forward(params, x, skip, *, spatial_factor):
    x = _conv_transpose_nonoverlap(x, params["up_w"], params["up_b"],
                                   spatial_factor)
    x = x + skip
    for blk in params["blocks"]:
        x = _convnext_block(x, blk)
    return x


# ---------------------------------------------------------------------------
# Pure-JAX references (no Pallas) for correctness checks.
# ---------------------------------------------------------------------------
def _pointwise_tail_reference(x4, skip, gamma, beta, w2, b2, w3, b3):
    xf = x4.astype(_F32)
    mean = jnp.mean(xf, axis=1, keepdims=True)
    var = jnp.mean((xf - mean) ** 2, axis=1, keepdims=True)
    xn = (xf - mean) * lax.rsqrt(var + EPS)
    xn = xn * gamma[None, :, None, None] + beta[None, :, None, None]
    h = jnp.einsum("oc,bchw->bohw", w2, xn,
                   precision=_HIGHEST, preferred_element_type=_F32)
    h = h + b2[None, :, None, None]
    h = jnp.where(h >= 0, h, LEAKY_SLOPE * h)
    y = jnp.einsum("oc,bchw->bohw", w3, h,
                   precision=_HIGHEST, preferred_element_type=_F32)
    y = y + b3[None, :, None, None]
    return (y + skip.astype(_F32)).astype(skip.dtype)


def _convnext_block_reference(x, p):
    c = x.shape[1]
    x4 = _depthwise_conv7(x, p["conv1_w"], p["conv1_b"], groups=c)
    return _pointwise_tail_reference(x4, x, p["ln_gamma"], p["ln_beta"],
                                     p["conv2_w"], p["conv2_b"],
                                     p["conv3_w"], p["conv3_b"])


def _decoder_reference(params, x, skip, spatial_factor):
    x = _conv_transpose_nonoverlap(x, params["up_w"], params["up_b"],
                                   spatial_factor)
    x = x + skip
    for blk in params["blocks"]:
        x = _convnext_block_reference(x, blk)
    return x


# ---------------------------------------------------------------------------
# Parameter construction.
# ---------------------------------------------------------------------------
def _init_convnext_params(key, c):
    k = jax.random.split(key, 8)
    c4 = 4 * c
    s = 0.1
    return dict(
        conv1_w=s * jax.random.normal(k[0], (c4, 1, 7, 7), jnp.float32),
        conv1_b=s * jax.random.normal(k[1], (c4,), jnp.float32),
        ln_gamma=1.0 + s * jax.random.normal(k[2], (c4,), jnp.float32),
        ln_beta=s * jax.random.normal(k[3], (c4,), jnp.float32),
        conv2_w=s * jax.random.normal(k[4], (c, c4), jnp.float32),
        conv2_b=s * jax.random.normal(k[5], (c,), jnp.float32),
        conv3_w=s * jax.random.normal(k[6], (c, c), jnp.float32),
        conv3_b=s * jax.random.normal(k[7], (c,), jnp.float32),
    )


def _init_decoder_params(key, c_in, c_out, spatial_factor, num_blocks):
    keys = jax.random.split(key, num_blocks + 2)
    return dict(
        up_w=0.1 * jax.random.normal(
            keys[0], (c_in, c_out, spatial_factor, spatial_factor),
            jnp.float32),
        up_b=0.1 * jax.random.normal(keys[1], (c_out,), jnp.float32),
        blocks=[_init_convnext_params(keys[2 + i], c_out)
                for i in range(num_blocks)],
    )


if __name__ == "__main__":
    key = jax.random.PRNGKey(0)
    k_par, k_x, k_skip, k_t = jax.random.split(key, 4)

    B, C_IN, C_OUT, FACTOR, H, W, NUM_BLOCKS = 2, 8, 4, 2, 8, 8, 2
    params = _init_decoder_params(k_par, C_IN, C_OUT, FACTOR, NUM_BLOCKS)
    x = jax.random.normal(k_x, (B, C_IN, H, W), jnp.float32)
    skip = jax.random.normal(k_skip, (B, C_OUT, H * FACTOR, W * FACTOR),
                             jnp.float32)

    # 1) Standalone check of the fused pointwise-tail kernel
    #    (lane-dense path, N = 16*16 = 256 >= 128).
    kk = jax.random.split(k_t, 8)
    C = 4
    x4 = jax.random.normal(kk[0], (2, 4 * C, 16, 16), jnp.float32)
    sk = jax.random.normal(kk[1], (2, C, 16, 16), jnp.float32)
    gamma = 1.0 + 0.1 * jax.random.normal(kk[2], (4 * C,), jnp.float32)
    beta = 0.1 * jax.random.normal(kk[3], (4 * C,), jnp.float32)
    w2 = 0.1 * jax.random.normal(kk[4], (C, 4 * C), jnp.float32)
    b2 = 0.1 * jax.random.normal(kk[5], (C,), jnp.float32)
    w3 = 0.1 * jax.random.normal(kk[6], (C, C), jnp.float32)
    b3 = 0.1 * jax.random.normal(kk[7], (C,), jnp.float32)
    out_t = jax.block_until_ready(
        convnext_pointwise_tail(x4, sk, gamma, beta, w2, b2, w3, b3))
    ref_t = _pointwise_tail_reference(x4, sk, gamma, beta, w2, b2, w3, b3)
    assert out_t.shape == sk.shape
    assert jnp.allclose(out_t, ref_t, atol=1e-4, rtol=1e-4), "tail mismatch"

    # 2) Small-spatial path (H*W = 64 < 128 -> batch folded into lanes).
    x4s = x4[:, :, :8, :8]
    sks = sk[:, :, :8, :8]
    out_s = jax.block_until_ready(
        convnext_pointwise_tail(x4s, sks, gamma, beta, w2, b2, w3, b3))
    ref_s = _pointwise_tail_reference(x4s, sks, gamma, beta, w2, b2, w3, b3)
    assert jnp.allclose(out_s, ref_s, atol=1e-4, rtol=1e-4), "small-N mismatch"

    # 3) Full DecoderModule forward (Pallas tail inside each ConvNeXt block)
    #    vs. a pure-JAX reference of the same graph.
    out = jax.block_until_ready(
        decoder_module_forward(params, x, skip, spatial_factor=FACTOR))
    ref = jax.block_until_ready(_decoder_reference(params, x, skip, FACTOR))
    assert out.shape == (B, C_OUT, H * FACTOR, W * FACTOR)
    assert jnp.allclose(out, ref, atol=1e-4, rtol=1e-4), "decoder mismatch"

    print("KERNEL_OK")
</pallas_src>

<mosaic_0001>
module attributes {stable_mosaic.version = 11 : i64} {
  func.func @_convnext_tail_kernel(%arg0: i32, %arg1: i32, %arg2: memref<1x16x256xf32, #tpu.memory_space<vmem>>, %arg3: memref<1x4x256xf32, #tpu.memory_space<vmem>>, %arg4: memref<16x2xf32, #tpu.memory_space<vmem>>, %arg5: memref<4x16xf32, #tpu.memory_space<vmem>>, %arg6: memref<4x4xf32, #tpu.memory_space<vmem>>, %arg7: memref<4x2xf32, #tpu.memory_space<vmem>>, %arg8: memref<1x4x256xf32, #tpu.memory_space<vmem>>) attributes {dimension_semantics = [#tpu.dimension_semantics<parallel>, #tpu.dimension_semantics<parallel>], iteration_bounds = array<i64: 2, 1>, scalar_prefetch = 0 : i64, scratch_operands = 0 : i64, tpu.core_type = #tpu.core_type<tc>, window_params = [{transform_indices = @transform_0, window_bounds = array<i64: 1, 16, 256>}, {transform_indices = @transform_1, window_bounds = array<i64: 1, 4, 256>}, {pipeline_mode = #tpu.pipeline_mode<synchronous>, transform_indices = @transform_2, window_bounds = array<i64: 16, 2>}, {pipeline_mode = #tpu.pipeline_mode<synchronous>, transform_indices = @transform_3, window_bounds = array<i64: 4, 16>}, {pipeline_mode = #tpu.pipeline_mode<synchronous>, transform_indices = @transform_4, window_bounds = array<i64: 4, 4>}, {pipeline_mode = #tpu.pipeline_mode<synchronous>, transform_indices = @transform_5, window_bounds = array<i64: 4, 2>}, {transform_indices = @transform_6, window_bounds = array<i64: 1, 4, 256>}]} {
    %c0 = arith.constant 0 : index
    %c0_0 = arith.constant 0 : index
    %c0_1 = arith.constant 0 : index
    %0 = vector.load %arg2[%c0, %c0_0, %c0_1] : memref<1x16x256xf32, #tpu.memory_space<vmem>>, vector<1x16x256xf32>
    %1 = vector.shape_cast %0 : vector<1x16x256xf32> to vector<16x256xf32>
    %c0_2 = arith.constant 0 : index
    %c0_3 = arith.constant 0 : index
    %2 = vector.load %arg4[%c0_2, %c0_3] : memref<16x2xf32, #tpu.memory_space<vmem>>, vector<16x1xf32>
    %c0_4 = arith.constant 0 : index
    %c1 = arith.constant 1 : index
    %3 = vector.load %arg4[%c0_4, %c1] : memref<16x2xf32, #tpu.memory_space<vmem>>, vector<16x1xf32>
    %cst = arith.constant dense<0.000000e+00> : vector<256xf32>
    %4 = vector.multi_reduction <add>, %1, %cst [0] : vector<16x256xf32> to vector<256xf32>
    %5 = vector.shape_cast %4 : vector<256xf32> to vector<1x256xf32>
    %cst_5 = arith.constant 1.600000e+01 : f32
    %6 = vector.broadcast %cst_5 : f32 to vector<1x256xf32>
    %7 = arith.divf %5, %6 : vector<1x256xf32>
    %8 = vector.broadcast %7 : vector<1x256xf32> to vector<16x256xf32>
    %9 = arith.subf %1, %8 : vector<16x256xf32>
    %10 = arith.mulf %9, %9 : vector<16x256xf32>
    %cst_6 = arith.constant dense<0.000000e+00> : vector<256xf32>
    %11 = vector.multi_reduction <add>, %10, %cst_6 [0] : vector<16x256xf32> to vector<256xf32>
    %12 = vector.shape_cast %11 : vector<256xf32> to vector<1x256xf32>
    %cst_7 = arith.constant 1.600000e+01 : f32
    %13 = vector.broadcast %cst_7 : f32 to vector<1x256xf32>
    %14 = arith.divf %12, %13 : vector<1x256xf32>
    %cst_8 = arith.constant 9.99999997E-7 : f32
    %15 = vector.broadcast %cst_8 : f32 to vector<1x256xf32>
    %16 = arith.addf %14, %15 : vector<1x256xf32>
    %17 = math.rsqrt %16 : vector<1x256xf32>
    %18 = vector.broadcast %17 : vector<1x256xf32> to vector<16x256xf32>
    %19 = arith.mulf %9, %18 : vector<16x256xf32>
    %20 = vector.broadcast %2 : vector<16x1xf32> to vector<16x256xf32>
    %21 = arith.mulf %19, %20 : vector<16x256xf32>
    %22 = vector.broadcast %3 : vector<16x1xf32> to vector<16x256xf32>
    %23 = arith.addf %21, %22 : vector<16x256xf32>
    %c0_9 = arith.constant 0 : index
    %c0_10 = arith.constant 0 : index
    %24 = vector.load %arg5[%c0_9, %c0_10] : memref<4x16xf32, #tpu.memory_space<vmem>>, vector<4x16xf32>
    %cst_11 = arith.constant dense<0.000000e+00> : vector<4x256xf32>
    %25 = tpu.matmul %24, %23, %cst_11 {dimension_numbers = #tpu.dot_dimension_numbers<[1], [0], [0], [1], [0, 0, 1, 1], [], []>, precision = #tpu.contract_precision<fp32>} : vector<4x16xf32>, vector<16x256xf32>, vector<4x256xf32> -> vector<4x256xf32>
    %c0_12 = arith.constant 0 : index
    %c0_13 = arith.constant 0 : index
    %26 = vector.load %arg7[%c0_12, %c0_13] : memref<4x2xf32, #tpu.memory_space<vmem>>, vector<4x1xf32>
    %27 = vector.broadcast %26 : vector<4x1xf32> to vector<4x256xf32>
    %28 = arith.addf %25, %27 : vector<4x256xf32>
    %cst_14 = arith.constant 0.000000e+00 : f32
    %29 = vector.broadcast %cst_14 : f32 to vector<4x256xf32>
    %30 = arith.cmpf oge, %28, %29 : vector<4x256xf32>
    %cst_15 = arith.constant 0.00999999977 : f32
    %31 = vector.broadcast %cst_15 : f32 to vector<4x256xf32>
    %32 = arith.mulf %31, %28 : vector<4x256xf32>
    %33 = arith.select %30, %28, %32 : vector<4x256xi1>, vector<4x256xf32>
    %c0_16 = arith.constant 0 : index
    %c0_17 = arith.constant 0 : index
    %34 = vector.load %arg6[%c0_16, %c0_17] : memref<4x4xf32, #tpu.memory_space<vmem>>, vector<4x4xf32>
    %cst_18 = arith.constant dense<0.000000e+00> : vector<4x256xf32>
    %35 = tpu.matmul %34, %33, %cst_18 {dimension_numbers = #tpu.dot_dimension_numbers<[1], [0], [0], [1], [0, 0, 1, 1], [], []>, precision = #tpu.contract_precision<fp32>} : vector<4x4xf32>, vector<4x256xf32>, vector<4x256xf32> -> vector<4x256xf32>
    %c0_19 = arith.constant 0 : index
    %c1_20 = arith.constant 1 : index
    %36 = vector.load %arg7[%c0_19, %c1_20] : memref<4x2xf32, #tpu.memory_space<vmem>>, vector<4x1xf32>
    %37 = vector.broadcast %36 : vector<4x1xf32> to vector<4x256xf32>
    %38 = arith.addf %35, %37 : vector<4x256xf32>
    %c0_21 = arith.constant 0 : index
    %c0_22 = arith.constant 0 : index
    %c0_23 = arith.constant 0 : index
    %39 = vector.load %arg3[%c0_21, %c0_22, %c0_23] : memref<1x4x256xf32, #tpu.memory_space<vmem>>, vector<1x4x256xf32>
    %40 = vector.shape_cast %39 : vector<1x4x256xf32> to vector<4x256xf32>
    %41 = arith.addf %38, %40 : vector<4x256xf32>
    %c0_24 = arith.constant 0 : index
    %c0_25 = arith.constant 0 : index
    %c0_26 = arith.constant 0 : index
    %42 = vector.load %arg8[%c0_24, %c0_25, %c0_26] : memref<1x4x256xf32, #tpu.memory_space<vmem>>, vector<1x4x256xf32>
    %43 = vector.shape_cast %42 : vector<1x4x256xf32> to vector<4x256xf32>
    %44 = vector.shape_cast %41 : vector<4x256xf32> to vector<1x4x256xf32>
    tpu.vector_store %arg8[%c0_24, %c0_25, %c0_26], %44 {strides = array<i32>} : memref<1x4x256xf32, #tpu.memory_space<vmem>>, vector<1x4x256xf32>,
    return
  }
  func.func @transform_0(%arg0: i32, %arg1: i32) -> (i32, i32, i32) {
    %c0_i32 = arith.constant 0 : i32
    %c0_i32_0 = arith.constant 0 : i32
    return %arg0, %c0_i32, %arg1 : i32, i32, i32
  }
  func.func @transform_1(%arg0: i32, %arg1: i32) -> (i32, i32, i32) {
    %c0_i32 = arith.constant 0 : i32
    %c0_i32_0 = arith.constant 0 : i32
    return %arg0, %c0_i32, %arg1 : i32, i32, i32
  }
  func.func @transform_2(%arg0: i32, %arg1: i32) -> (i32, i32) {
    %c0_i32 = arith.constant 0 : i32
    %c0_i32_0 = arith.constant 0 : i32
    %c0_i32_1 = arith.constant 0 : i32
    return %c0_i32, %c0_i32_0 : i32, i32
  }
  func.func @transform_3(%arg0: i32, %arg1: i32) -> (i32, i32) {
    %c0_i32 = arith.constant 0 : i32
    %c0_i32_0 = arith.constant 0 : i32
    %c0_i32_1 = arith.constant 0 : i32
    return %c0_i32, %c0_i32_0 : i32, i32
  }
  func.func @transform_4(%arg0: i32, %arg1: i32) -> (i32, i32) {
    %c0_i32 = arith.constant 0 : i32
    %c0_i32_0 = arith.constant 0 : i32
    %c0_i32_1 = arith.constant 0 : i32
    return %c0_i32, %c0_i32_0 : i32, i32
  }
  func.func @transform_5(%arg0: i32, %arg1: i32) -> (i32, i32) {
    %c0_i32 = arith.constant 0 : i32
    %c0_i32_0 = arith.constant 0 : i32
    %c0_i32_1 = arith.constant 0 : i32
    return %c0_i32, %c0_i32_0 : i32, i32
  }
  func.func @transform_6(%arg0: i32, %arg1: i32) -> (i32, i32, i32) {
    %c0_i32 = arith.constant 0 : i32
    %c0_i32_0 = arith.constant 0 : i32
    return %arg0, %c0_i32, %arg1 : i32, i32, i32
  }
}

</mosaic_0001>

<bundles_post_ra>
// kernel: convnext_pointwise_tail.1
= control target key start
LH: loop header
LB: loop body
LE: loop exit
PB: predicated region body
PF: predicated region fallthrough
CT: control target
= control target key end

     0   :  { %s1674_s21 = smov 0   ;;  %s1676_s22 = smov 0   ;;  %s1747_s0 = inlined_call_operand.vmem [shape: f32[2,16,256], index: 0, kind: input, shape index: {}]   ;;  %s1748_s1 = inlined_call_operand.vmem [shape: f32[2,4,256], index: 1, kind: input, shape index: {}]   ;;  %s1749_s2 = inlined_call_operand.vmem [shape: f32[16,2], index: 2, kind: input, shape index: {}]   ;;  %s1750_s3 = inlined_call_operand.vmem [shape: f32[4,16], index: 3, kind: input, shape index: {}]   ;;  %s1751_s4 = inlined_call_operand.vmem [shape: f32[4,4], index: 4, kind: input, shape index: {}]   ;;  %s1752_s5 = inlined_call_operand.vmem [shape: f32[4,2], index: 5, kind: input, shape index: {}]   ;;  %s1753_s6 = inlined_call_operand.vmem [shape: f32[2,4,256], index: 6, kind: output, shape index: {}]  }
   0x1   :  { %s1678_s23 = smov 0  }
   0x2 LB: > { %s28_s24 = sadd.s32 1, %s1630_s22  ;;  %p1517_p0 = scmp.ge.s32.totalorder %s1634_s23, 1  ;;  %s1634_s23 = sphi %s1678_s23, %s16_s23   ;;  %s1630_s22 = sphi %s1676_s22, %s1755_s22   ;;  %s1626_s21 = sphi %s1674_s21, %s1754_s21  }
   0x3   : > { %p30_p1 = scmp.ge.s32.totalorder %s28_s24, 2  ;;  %p250_p2 = scmp.lt.s32.totalorder %s1634_s23, 3 }
   0x5   : > { %s1757_s24 = smov (%p30_p1, %s28_s24), 0  ;;  %p251_p3 = pnand %p1517_p0, %p250_p2 }
   0x6   : > { %v331_v0 = vld [vmem:[%s1749_s2] sm:$0xff] (!%p251_p3)  ;;  %v1636_v1 = vmov (!%p251_p3), 1   ;;  %v1637_v2 = vmov (!%p251_p3), 0   ;;  %v332_v3 = vld [vmem:[%s1749_s2 + $0x8] sm:$0xff] (!%p251_p3)  ;;  %v1638_v5 = vmov (!%p251_p3), 0.0   ;;  %p298_p4 = scmp.lt.s32.totalorder (!%p251_p3), %s1626_s21, 1 }
   0x7   : > { %254 = sbr.rel (%p251_p3) target bundleno = 675 (0x2a3), region = 44  ;;  %1605 = vset.pattern.permute.xlu1 (!%p251_p3), %v1636_v1  ;;  %1604 = vset.pattern.permute.xlu0 (!%p251_p3), %v1637_v2  ;;  %v409_v4 = vld [vmem:[%s1752_s5] sm:$0xf] (!%p251_p3)  ;;  %vm415_vm0 = vcmask (!%p251_p3), 130048   ;;  %vm921_vm1 = vcmask (!%p251_p3), 31744   ;;  %vm925_vm3 = vcmask (!%p251_p3), 1043456  }
   0x8   : > { %397 = vperm.xlu1 (!%p251_p3), %1605, %v331_v0   ;;  %384 = vperm.xlu0 (!%p251_p3), %1604, %v331_v0   ;;  %v408_v52 = vld [vmem:[%s1750_s3] sm:$0xf] (!%p251_p3) }
   0x9   : > { %487 = vmatprep.mubr.f32.mxu0 (!%p251_p3), %v1638_v5  ;;  %998 = vmatprep.mubr.f32.mxu1 (!%p251_p3), %v1638_v5  ;;  %v417_v54 = vsel (!%p251_p3), %vm415_vm0, %v408_v52, 0 }
   0xa   : > { %v1712_v56 = vand.u32 (!%p251_p3), 4294901760, %v417_v54 }
   0xc   : > { %401 = vperm.xlu1 (!%p251_p3), %1605, %v332_v3   ;;  %389 = vperm.xlu0 (!%p251_p3), %1604, %v332_v3   ;;  %v489_v61 = vsub.f32 (!%p251_p3), %v417_v54, %v1712_v56 }
   0xe   : > { %s1759_s21 = smov (!%p298_p4, %s1626_s21), 1 }
   0xf   : > { %s1526_s7 = sshll.u32 %s1759_s21, 5  ;;  %s1527_s15 = sshll.u32 %s1759_s21, 3 }
  0x10   : > { %918 = vperm.xlu1 %1605, %v409_v4   ;;  %412 = vperm.xlu0 %1604, %v409_v4   ;;  %s305_s10 = scalar_lea.vmem %s1747_s0, %s1526_s7  ;;  %s315_s18 = scalar_lea.vmem %s1748_s1, %s1527_s15 }
  0x11   : > { %v327_v6 = vld [vmem:[%s305_s10] sm:$0xff]  ;;  %v329_v7 = vld [vmem:[%s305_s10 + $0x10] sm:$0xff]  ;;  %v328_v8 = vld [vmem:[%s305_s10 + $0x8] sm:$0xff]  ;;  %s325_s25 = scalar_lea.vmem %s1753_s6, %s1527_s15 }
  0x12   : > { %v330_v9 = vld [vmem:[%s305_s10 + $0x18] sm:$0xff]  ;;  %v333_v10 = vadd.f32 %v329_v7, %v327_v6 }
  0x13   : > { %v340_v11 = vadd.f32 %v330_v9, %v328_v8 }
  0x14   : > { %1606 = vset.pattern.permute.xlu0 %v1636_v1  ;;  %v334_v12 = vrot.slane %v333_v10, 4 }
  0x15   : > { %v341_v13 = vrot.slane %v340_v11, 4 }
  0x16   : > { %v335_v14 = vadd.f32 %v334_v12, %v333_v10 }
  0x17   : > { %v342_v15 = vadd.f32 %v341_v13, %v340_v11 }
  0x18   : > { %v336_v16 = vrot.slane %v335_v14, 2 }
  0x19   : > { %v343_v17 = vrot.slane %v342_v15, 2 }
  0x1a   : > { %v337_v18 = vadd.f32 %v336_v16, %v335_v14 }
  0x1b   : > { %v344_v19 = vadd.f32 %v343_v17, %v342_v15 }
  0x1c   : > { %v338_v20 = vrot.slane %v337_v18, 1 }
  0x1d   : > { %v345_v21 = vrot.slane %v344_v19, 1 }
  0x1e   : > { %v339_v22 = vadd.f32 %v338_v20, %v337_v18 }
  0x1f   : > { %v346_v23 = vadd.f32 %v345_v21, %v344_v19 }
  0x20   : > { %v348_v24 = vmul.f32 0.0625, %v339_v22 }
  0x21   : > { %v349_v25 = vmul.f32 0.0625, %v346_v23 }
  0x22   : > { %v350_v26 = vsub.f32 %v327_v6, %v348_v24  ;;  %v352_v27 = vsub.f32 %v329_v7, %v348_v24  ;;  %v490_v6 = vand.u32 4294901760, %v489_v61 }
  0x23   : > { %v351_v28 = vsub.f32 %v328_v8, %v349_v25  ;;  %v353_v29 = vsub.f32 %v330_v9, %v349_v25 }
  0x24   : > { %v354_v30 = vmul.f32 %v350_v26, %v350_v26  ;;  %v356_v31 = vmul.f32 %v352_v27, %v352_v27  ;;  %v491_v16 = vsub.f32 %v489_v61, %v490_v6 }
  0x25   : > { %v355_v32 = vmul.f32 %v351_v28, %v351_v28  ;;  %v357_v33 = vmul.f32 %v353_v29, %v353_v29 }
  0x26   : > { %v358_v34 = vadd.f32 %v356_v31, %v354_v30  ;;  %v492_v25 = vand.u32 4294901760, %v491_v16 }
  0x27   : > { %v365_v35 = vadd.f32 %v357_v33, %v355_v32 }
  0x28   : > { %v359_v36 = vrot.slane %v358_v34, 4 }
  0x29   : > { %v366_v37 = vrot.slane %v365_v35, 4 }
  0x2a   : > { %v360_v38 = vadd.f32 %v359_v36, %v358_v34 }
  0x2b   : > { %v367_v39 = vadd.f32 %v366_v37, %v365_v35 }
  0x2c   : > { %v361_v40 = vrot.slane %v360_v38, 2 }
  0x2d   : > { %v368_v41 = vrot.slane %v367_v39, 2 }
  0x2e   : > { %v362_v42 = vadd.f32 %v361_v40, %v360_v38 }
  0x2f   : > { %v369_v43 = vadd.f32 %v368_v41, %v367_v39 }
  0x30   : > { %v363_v44 = vrot.slane %v362_v42, 1 }
  0x31   : > { %v370_v45 = vrot.slane %v369_v43, 1 }
  0x32   : > { %v364_v46 = vadd.f32 %v363_v44, %v362_v42  ;;  %v916_v42 = vld [vmem:[%s1751_s4] sm:$0xf] }
  0x33   : > { %v371_v47 = vadd.f32 %v370_v45, %v369_v43  ;;  %v923_v43 = vsel %vm921_vm1, %v916_v42, 0 }
  0x34   : > { %v372_v48 = vmul.f32 0.0625, %v364_v46  ;;  %v999_v44 = vand.u32 4294901760, %v923_v43 }
  0x35   : > { %v373_v49 = vmul.f32 0.0625, %v371_v47 }
  0x36   : > { %v374_v50 = vadd.f32 1e-06, %v372_v48  ;;  %v1000_v45 = vsub.f32 %v923_v43, %v999_v44 }
  0x37   : > { %v375_v51 = vadd.f32 1e-06, %v373_v49 }
  0x38   : > { %1608 = vrsqrt.f32 %v374_v50  ;;  %v1001_v48 = vand.u32 4294901760, %v1000_v45 }
  0x39   : > { %1610 = vrsqrt.f32 %v375_v51 }
  0x3a   : > { %v1002_v54 = vsub.f32 %v1000_v45, %v1001_v48 }
  0x42   : > { %v1609_v53 = vpop.eup %1608 }
  0x43   : > { %v1611_v55 = vpop.eup %1610  ;;  %v378_v57 = vmul.f32 %v1609_v53, %v350_v26  ;;  %v380_v0 = vmul.f32 %v1609_v53, %v352_v27 }
  0x44   : > { %v379_v58 = vmul.f32 %v1611_v55, %v351_v28  ;;  %v381_v1 = vmul.f32 %v1611_v55, %v353_v29 }
  0x87   : > { %v398_v59 = vpop.permute.xlu1 %397  ;;  %v385_v60 = vpop.permute.xlu0 %384 }
  0x88   : > { %v392_v62 = vmul.f32 %v385_v60, %v378_v57  ;;  %v393_v63 = vmul.f32 %v385_v60, %v379_v58 }
  0x8a   : > { %v404_v2 = vadd.f32 %v398_v59, %v392_v62  ;;  %v405_v3 = vadd.f32 %v398_v59, %v393_v63 }
  0x8b   : > { %v390_v4 = vpop.permute.xlu0 %389  ;;  %v402_v11 = vpop.permute.xlu1 %401 }
  0x8c   : > { %v419_v7 = vand.u32 4294901760, %v405_v3  ;;  %v421_v8 = vand.u32 4294901760, %v404_v2  ;;  %v394_v9 = vmul.f32 %v390_v4, %v380_v0  ;;  %v395_v10 = vmul.f32 %v390_v4, %v381_v1 }
  0x8e   : > { %v500_v12 = vsub.f32 %v405_v3, %v419_v7  ;;  %v506_v13 = vsub.f32 %v404_v2, %v421_v8  ;;  %v406_v14 = vadd.f32 %v402_v11, %v394_v9  ;;  %v407_v15 = vadd.f32 %v402_v11, %v395_v10 }
  0x8f   : > { %v413_v46 = vpop.permute.xlu0 %412 }
  0x90   : > { %v507_v17 = vand.u32 4294901760, %v506_v13  ;;  %v423_v18 = vand.u32 4294901760, %v407_v15  ;;  %v425_v19 = vand.u32 4294901760, %v406_v14  ;;  %v501_v20 = vand.u32 4294901760, %v500_v12 }
  0x92   : > { %v512_v21 = vsub.f32 %v407_v15, %v423_v18  ;;  %v518_v22 = vsub.f32 %v406_v14, %v425_v19  ;;  %v1529_v23 = vpack.c.bf16 %v423_v18, %v419_v7  ;;  %v1531_v24 = vpack.c.bf16 %v425_v19, %v421_v8  ;;  %v1397_v7 = vld [vmem:[%s315_s18] sm:$0xff]  ;;  %v919_v8 = vpop.permute.xlu1 %918 }
  0x93   : > { %v502_v27 = vsub.f32 %v500_v12, %v501_v20  ;;  %v508_v29 = vsub.f32 %v506_v13, %v507_v17  ;;  %v1399_v10 = vcombine.high %v1397_v7, %v1397_v7 }
  0x94   : > { %v519_v26 = vand.u32 4294901760, %v518_v22  ;;  %1530 = vmatprep.subr.bf16.mxu0 %v1529_v23  ;;  %v513_v28 = vand.u32 4294901760, %v512_v21  ;;  %v1537_v38 = vpack.c.bf16 %v512_v21, %v500_v12  ;;  %v1539_v39 = vpack.c.bf16 %v518_v22, %v506_v13 }
  0x95   : > { %1532 = vmatpush1.bf16.msra.mxu0 %v1531_v24  ;;  %v503_v32 = vand.u32 4294901760, %v502_v27  ;;  %v509_v34 = vand.u32 4294901760, %v508_v29 }
  0x96   : > { %v514_v30 = vsub.f32 %v512_v21, %v513_v28  ;;  %v520_v31 = vsub.f32 %v518_v22, %v519_v26  ;;  %v1545_v40 = vpack.c.bf16 %v513_v28, %v501_v20  ;;  %v1547_v41 = vpack.c.bf16 %v519_v26, %v507_v17 }
  0x98   : > { %493 = vmatmul.mubr.f32.vlgmr.msra.gmra.mrb[0].mxu0 %v492_v25  ;;  %v515_v33 = vand.u32 4294901760, %v514_v30  ;;  %v521_v35 = vand.u32 4294901760, %v520_v31 }
  0x99   : > { %583 = vmatprep.mubr.f32.mxu0 %v1638_v5 }
  0x9a   : > { %v1533_v36 = vpack.c.bf16 %v515_v33, %v503_v32  ;;  %v1535_v37 = vpack.c.bf16 %v521_v35, %v509_v34 }
  0x9c   : > { %1534 = vmatprep.subr.bf16.mxu0 %v1533_v36 }
  0x9d   : > { %1536 = vmatpush1.bf16.msra.mxu0 %v1535_v37 }
  0x9e   : > { %1538 = vmatprep.subr.bf16.mxu0 %v1537_v38 }
  0xa0   : > { %585 = vmatmul.mubr.f32.vlgmr.msra.gmra.mrb[0].mxu0 %v1712_v56 }
  0xa1   : > { %1540 = vmatpush1.bf16.msra.mxu0 %v1539_v39  ;;  %663 = vmatprep.mubr.f32.mxu0 %v1638_v5 }
  0xa2   : > { %1542 = vmatprep.subr.bf16.mxu0 %v1529_v23 }
  0xa8   : > { %666 = vmatmul.mubr.f32.vlgmr.msra.gmra.mrb[0].mxu0 %v489_v61  ;;  %v1003_v61 = vand.u32 4294901760, %v1002_v54 }
  0xa9   : > { %1544 = vmatpush1.bf16.msra.mxu0 %v1531_v24  ;;  %740 = vmatprep.mubr.f32.mxu0 %v1638_v5 }
  0xaa   : > { %1546 = vmatprep.subr.bf16.mxu0 %v1545_v40 }
  0xb0   : > { %744 = vmatmul.mubr.f32.vlgmr.msra.gmra.mrb[0].mxu0 %v490_v6 }
  0xb1   : > { %1548 = vmatpush1.bf16.msra.mxu0 %v1547_v41  ;;  %826 = vmatprep.mubr.f32.mxu0 %v1638_v5 }
  0xb2   : > { %1550 = vmatprep.subr.bf16.mxu0 %v1529_v23 }
  0xb8   : > { %828 = vmatmul.mubr.f32.vlgmr.msra.gmra.mrb[0].mxu0 %v1712_v56 }
  0xb9   : > { %1552 = vmatpush1.bf16.msra.mxu0 %v1531_v24  ;;  %902 = vmatprep.mubr.f32.mxu0 %v1638_v5 }
  0xc0   : > { %904 = vmatmul.mubr.f32.vlgmr.msra.gmra.mrb[0].mxu0 %v1712_v56 }
 0x193   : > { %v905_v47 = vpop.f32.mrb[0].mxu0 }
 0x194   : > { %v1553_v49 = vadd.f32 %v905_v47, %v413_v46  ;;  %v907_v50 = vpop.f32.mrb[1].mxu0 }
 0x195   : > { %v1554_v51 = vadd.f32 %v907_v50, %v413_v46 }
 0x196   : > { %vm910_vm2 = vcmp.ge.f32.partialorder %v1553_v49, 0.0  ;;  %v912_v52 = vmul.f32 0.01, %v1553_v49 }
 0x197   : > { %vm911_vm4 = vcmp.ge.f32.partialorder %v1554_v51, 0.0  ;;  %v913_v53 = vmul.f32 0.01, %v1554_v51 }
 0x198   : > { %v914_v55 = vsel %vm910_vm2, %v1553_v49, %v912_v52 }
 0x199   : > { %v927_v56 = vsel %vm925_vm3, %v914_v55, 0  ;;  %v915_v57 = vsel %vm911_vm4, %v1554_v51, %v913_v53 }
 0x19a   : > { %v934_v58 = vand.u32 4294901760, %v927_v56  ;;  %v930_v59 = vsel %vm925_vm3, %v915_v57, 0 }
 0x19b   : > { %v932_v60 = vand.u32 4294901760, %v930_v59 }
 0x19c   : > { %v1017_v62 = vsub.f32 %v927_v56, %v934_v58 }
 0x19d   : > { %v1011_v63 = vsub.f32 %v930_v59, %v932_v60  ;;  %933 = vmatprep.subr.mxu1 %v932_v60 }
 0x19e   : > { %935 = vmatpush1.msra.mxu1 %v934_v58  ;;  %v1018_v0 = vand.u32 4294901760, %v1017_v62 }
 0x19f   : > { %1004 = vmatmul.mubr.f32.vlgmr.msra.gmra.mrb[0].mxu1 %v1003_v61  ;;  %v1012_v1 = vand.u32 4294901760, %v1011_v63 }
 0x1a0   : > { %v1019_v2 = vsub.f32 %v1017_v62, %v1018_v0  ;;  %1084 = vmatprep.mubr.f32.mxu1 %v1638_v5 }
 0x1a1   : > { %v1013_v3 = vsub.f32 %v1011_v63, %v1012_v1 }
 0x1a2   : > { %v1020_v6 = vand.u32 4294901760, %v1019_v2 }
 0x1a3   : > { %v1014_v4 = vand.u32 4294901760, %v1013_v3 }
 0x1a5   : > { %1015 = vmatprep.subr.mxu1 %v1014_v4 }
 0x1a6   : > { %1021 = vmatpush1.msra.mxu1 %v1020_v6 }
 0x1a7   : > { %1086 = vmatmul.mubr.f32.vlgmr.msra.gmra.mrb[0].mxu1 %v999_v44  ;;  %1094 = vmatprep.subr.mxu1 %v1011_v63 }
 0x1a8   : > { %1097 = vmatpush1.msra.mxu1 %v1017_v62  ;;  %1160 = vmatprep.mubr.f32.mxu1 %v1638_v5 }
 0x1a9   : > { %1170 = vmatprep.subr.mxu1 %v932_v60 }
 0x1af   : > { %1163 = vmatmul.mubr.f32.vlgmr.msra.gmra.mrb[0].mxu1 %v1000_v45 }
 0x1b0   : > { %1172 = vmatpush1.msra.mxu1 %v934_v58  ;;  %1235 = vmatprep.mubr.f32.mxu1 %v1638_v5 }
 0x1b1   : > { %1248 = vmatprep.subr.mxu1 %v1012_v1 }
 0x1b7   : > { %1239 = vmatmul.mubr.f32.vlgmr.msra.gmra.mrb[0].mxu1 %v1001_v48 }
 0x1b8   : > { %1252 = vmatpush1.msra.mxu1 %v1018_v0  ;;  %1315 = vmatprep.mubr.f32.mxu1 %v1638_v5 }
 0x1b9   : > { %1324 = vmatprep.subr.mxu1 %v932_v60 }
 0x1bf   : > { %1317 = vmatmul.mubr.f32.vlgmr.msra.gmra.mrb[0].mxu1 %v999_v44 }
 0x1c0   : > { %1326 = vmatpush1.msra.mxu1 %v934_v58  ;;  %1389 = vmatprep.mubr.f32.mxu1 %v1638_v5 }
 0x1c7   : > { %1391 = vmatmul.mubr.f32.vlgmr.msra.gmra.mrb[0].mxu1 %v999_v44 }
 0x29a   : > { %v1392_v9 = vpop.f32.mrb[0].mxu1 }
 0x29b   : > { %v1555_v11 = vadd.f32 %v1392_v9, %v919_v8  ;;  %v1394_v12 = vpop.f32.mrb[1].mxu1 }
 0x29c   : > { %v1556_v13 = vadd.f32 %v1394_v12, %v919_v8 }
 0x29d   : > { %v1401_v14 = vadd.f32 %v1555_v11, %v1397_v7 }
 0x29e   : > { %v1402_v15 = vadd.f32 %v1556_v13, %v1399_v10 }
 0x2a0   : > { %v1405_v5 = vcombine.low %v1401_v14, %v1402_v15 }
 0x2a2   : > { %1407 = vst [vmem:[%s325_s25] sm:$0xff] %v1405_v5 }
 0x2a3 PF: > { %s16_s23 = sadd.s32 1, %s1634_s23   ;;  %s1754_s21 = smov %s1630_s22 }
 0x2a4   : > { %p13_p5 = scmp.ge.s32.totalorder %s16_s23, 4   ;;  %s1755_s22 = smov %s1757_s24 }
 0x2a6   :  { %15 = sbr.rel (!%p13_p5) target bundleno = 2 (0x2), region = 77 }

</bundles_post_ra>
